<compile_context>
chip_gen: v7x
topology: tpu7x:2x2x1
jax: 0.10.0
libtpu: 0.0.40
codegen_flags: <defaults>
</compile_context>

<pallas_src>
import functools

import jax
import jax.numpy as jnp
import numpy as np
from jax import lax
from jax.experimental import pallas as pl
from jax.experimental.pallas import tpu as pltpu


def _backward_divergence_kernel(y0_ref, y1_ref, out_ref, carry_ref, *, m_total):
    i = pl.program_id(0)
    tm, n = out_ref.shape                       # (block_m, N)

    # Zero the row-carry at the first grid step: global row 0 has no row above.
    @pl.when(i == 0)
    def _init():
        carry_ref[...] = jnp.zeros_like(carry_ref)

    y0 = y0_ref[...].astype(jnp.float32)        # horizontal dual, (block_m, N)
    y1 = y1_ref[...].astype(jnp.float32)        # vertical   dual, (block_m, N)

    col = lax.broadcasted_iota(jnp.int32, (1, n), 1)     # (1, N) lane ids
    lrow = lax.broadcasted_iota(jnp.int32, (tm, 1), 0)   # (block_m, 1) local rows
    grow = lrow + i * tm                                 # global row ids

    # Horizontal: d_h[:, j] = mask(y0)[:, j] - y0[:, j-1]   (0 past the edges)
    y0_shift = pltpu.roll(y0, shift=1, axis=1)           # XLU lane rotate
    d_h = (jnp.where(col < n - 1, y0, 0.0)
           - jnp.where(col > 0, y0_shift, 0.0))

    # Vertical: d_v[r, :] = mask(y1)[r, :] - y1[r-1, :]; the r-1 row for the
    # first row of this block comes from the previous block via the carry.
    y1_roll = pltpu.roll(y1, shift=1, axis=0)            # XLU sublane rotate
    y1_shift = jnp.where(lrow > 0, y1_roll, carry_ref[...])
    d_v = jnp.where(grow < m_total - 1, y1, 0.0) - y1_shift

    out_ref[...] = (d_h + d_v).astype(out_ref.dtype)

    # Carry this block's last y1 row into the next grid step.
    carry_ref[...] = y1[tm - 1:tm, :]


def _pick_block_m(M, N):
    """Largest multiple-of-8 row tile keeping double-buffered blocks ~<=20 MiB."""
    if M <= 8:
        return M
    bytes_per_row = 3 * N * 4 * 2           # (y0 + y1 + out) f32, double-buffered
    cap = ((20 * 1024 * 1024) // bytes_per_row) // 8 * 8
    cap = max(8, min(cap, 1024))
    full_rows = (M // 8) * 8 if M % 8 else M
    return min(cap, full_rows, M)


def backward_divergence(y, *, block_m=None):
    """y: (2, M, N) dual variable (any float dtype) -> (1, M, N) f32 divergence."""
    two, M, N = y.shape
    if two != 2:
        raise ValueError("expected dual variable of shape (2, M, N)")
    if block_m is None:
        block_m = _pick_block_m(M, N)
    block_m = min(block_m, M)
    grid_m = pl.cdiv(M, block_m)

    kernel = functools.partial(_backward_divergence_kernel, m_total=M)

    # Squeezed leading dim -> kernel sees clean 2-D (block_m, N) refs.
    y0_spec = pl.BlockSpec((None, block_m, N), lambda i: (0, i, 0))
    y1_spec = pl.BlockSpec((None, block_m, N), lambda i: (1, i, 0))
    out_spec = pl.BlockSpec((None, block_m, N), lambda i: (0, i, 0))

    return pl.pallas_call(
        kernel,
        grid=(grid_m,),
        in_specs=[y0_spec, y1_spec],
        out_specs=out_spec,
        out_shape=jax.ShapeDtypeStruct((1, M, N), jnp.float32),
        scratch_shapes=[pltpu.VMEM((1, N), jnp.float32)],   # row carry
        compiler_params=pltpu.CompilerParams(
            # Sequential row-carry across blocks -> reduction-style axis.
            dimension_semantics=("arbitrary",),
            vmem_limit_bytes=32 * 1024 * 1024,
        ),
    )(y, y)   # same HBM buffer, two block-streams (component 0 and 1)


def _reference(y):
    """Pure-JAX reference mirroring the PyTorch module."""
    _, M, N = y.shape
    y = y.astype(jnp.float32)
    d_h = jnp.zeros((1, M, N), jnp.float32)
    d_h = d_h.at[0, :, 0].set(y[0, :, 0])
    d_h = d_h.at[0, :, 1:-1].set(y[0, :, 1:-1] - y[0, :, :-2])
    d_h = d_h.at[0, :, -1].set(-y[0, :, -2])
    d_v = jnp.zeros((1, M, N), jnp.float32)
    d_v = d_v.at[0, 0, :].set(y[1, 0, :])
    d_v = d_v.at[0, 1:-1, :].set(y[1, 1:-1, :] - y[1, :-2, :])
    d_v = d_v.at[0, -1, :].set(-y[1, -2, :])
    return d_h + d_v


if __name__ == "__main__":
    M, N = 16, 24
    key = jax.random.PRNGKey(0)
    y = jax.random.normal(key, (2, M, N), dtype=jnp.float32)

    ref = jax.block_until_ready(_reference(y))

    # Tiled path (grid of 2 row-blocks) exercises the cross-block row carry.
    out_tiled = jax.block_until_ready(backward_divergence(y, block_m=8))
    np.testing.assert_allclose(np.asarray(out_tiled), np.asarray(ref),
                               rtol=1e-5, atol=1e-5)

    # Default auto-tiled path.
    out_auto = jax.block_until_ready(backward_divergence(y))
    np.testing.assert_allclose(np.asarray(out_auto), np.asarray(ref),
                               rtol=1e-5, atol=1e-5)

    # Native bf16 input (cast happens inside the kernel, not in the wrapper).
    y_bf16 = y.astype(jnp.bfloat16)
    out_bf16 = jax.block_until_ready(backward_divergence(y_bf16, block_m=8))
    ref_bf16 = jax.block_until_ready(_reference(y_bf16))
    np.testing.assert_allclose(np.asarray(out_bf16), np.asarray(ref_bf16),
                               rtol=1e-5, atol=1e-5)

    print("KERNEL_OK")
</pallas_src>

<mosaic_0001>
module attributes {stable_mosaic.version = 11 : i64} {
  func.func @_backward_divergence_kernel(%arg0: i32, %arg1: memref<1x8x24xf32, #tpu.memory_space<vmem>>, %arg2: memref<1x8x24xf32, #tpu.memory_space<vmem>>, %arg3: memref<1x8x24xf32, #tpu.memory_space<vmem>>, %arg4: memref<1x24xf32, #tpu.memory_space<vmem>>) attributes {dimension_semantics = [#tpu.dimension_semantics<arbitrary>], iteration_bounds = array<i64: 2>, scalar_prefetch = 0 : i64, scratch_operands = 1 : i64, tpu.core_type = #tpu.core_type<tc>, window_params = [{transform_indices = @transform_0, window_bounds = array<i64: 1, 8, 24>}, {transform_indices = @transform_1, window_bounds = array<i64: 1, 8, 24>}, {transform_indices = @transform_2, window_bounds = array<i64: 1, 8, 24>}]} {
    %c0_i32 = arith.constant 0 : i32
    %0 = arith.cmpi eq, %arg0, %c0_i32 : i32
    %1 = arith.extui %0 : i1 to i32
    %c0_i32_0 = arith.constant 0 : i32
    %2 = arith.cmpi ne, %1, %c0_i32_0 : i32
    scf.if %2 {
      %cst_18 = arith.constant 0.000000e+00 : f32
      %48 = vector.broadcast %cst_18 : f32 to vector<1x24xf32>
      %c0_19 = arith.constant 0 : index
      %c0_20 = arith.constant 0 : index
      %49 = vector.load %arg4[%c0_19, %c0_20] : memref<1x24xf32, #tpu.memory_space<vmem>>, vector<1x24xf32>
      tpu.vector_store %arg4[%c0_19, %c0_20], %48 {strides = array<i32>} : memref<1x24xf32, #tpu.memory_space<vmem>>, vector<1x24xf32>,
    } else {
    }
    %c0 = arith.constant 0 : index
    %c0_1 = arith.constant 0 : index
    %c0_2 = arith.constant 0 : index
    %3 = vector.load %arg1[%c0, %c0_1, %c0_2] : memref<1x8x24xf32, #tpu.memory_space<vmem>>, vector<1x8x24xf32>
    %4 = vector.shape_cast %3 : vector<1x8x24xf32> to vector<8x24xf32>
    %c0_3 = arith.constant 0 : index
    %c0_4 = arith.constant 0 : index
    %c0_5 = arith.constant 0 : index
    %5 = vector.load %arg2[%c0_3, %c0_4, %c0_5] : memref<1x8x24xf32, #tpu.memory_space<vmem>>, vector<1x8x24xf32>
    %6 = vector.shape_cast %5 : vector<1x8x24xf32> to vector<8x24xf32>
    %7 = tpu.iota {dimensions = array<i32: 1>} : vector<1x24xi32>
    %8 = tpu.iota {dimensions = array<i32: 0>} : vector<8x1xi32>
    %c8_i32 = arith.constant 8 : i32
    %9 = arith.muli %arg0, %c8_i32 : i32
    %10 = vector.broadcast %9 : i32 to vector<8x1xi32>
    %11 = arith.addi %8, %10 : vector<8x1xi32>
    %c1_i32 = arith.constant 1 : i32
    %12 = tpu.dynamic_rotate %4 by %c1_i32 dim 1 : vector<8x24xf32>, i32 -> vector<8x24xf32>
    %c23_i32 = arith.constant 23 : i32
    %13 = vector.broadcast %c23_i32 : i32 to vector<1x24xi32>
    %14 = arith.cmpi slt, %7, %13 : vector<1x24xi32>
    %cst = arith.constant 0.000000e+00 : f32
    %15 = vector.shape_cast %14 : vector<1x24xi1> to vector<1x24xi1>
    %16 = vector.broadcast %15 : vector<1x24xi1> to vector<8x24xi1>
    %17 = vector.broadcast %cst : f32 to vector<8x24xf32>
    %18 = arith.select %16, %4, %17 : vector<8x24xi1>, vector<8x24xf32>
    %c0_i32_6 = arith.constant 0 : i32
    %19 = vector.broadcast %c0_i32_6 : i32 to vector<1x24xi32>
    %20 = arith.cmpi sgt, %7, %19 : vector<1x24xi32>
    %cst_7 = arith.constant 0.000000e+00 : f32
    %21 = vector.shape_cast %20 : vector<1x24xi1> to vector<1x24xi1>
    %22 = vector.broadcast %21 : vector<1x24xi1> to vector<8x24xi1>
    %23 = vector.broadcast %cst_7 : f32 to vector<8x24xf32>
    %24 = arith.select %22, %12, %23 : vector<8x24xi1>, vector<8x24xf32>
    %25 = arith.subf %18, %24 : vector<8x24xf32>
    %c1_i32_8 = arith.constant 1 : i32
    %26 = tpu.dynamic_rotate %6 by %c1_i32_8 dim 0 : vector<8x24xf32>, i32 -> vector<8x24xf32>
    %c0_i32_9 = arith.constant 0 : i32
    %27 = vector.broadcast %c0_i32_9 : i32 to vector<8x1xi32>
    %28 = arith.cmpi sgt, %8, %27 : vector<8x1xi32>
    %c0_10 = arith.constant 0 : index
    %c0_11 = arith.constant 0 : index
    %29 = vector.load %arg4[%c0_10, %c0_11] : memref<1x24xf32, #tpu.memory_space<vmem>>, vector<1x24xf32>
    %30 = vector.shape_cast %28 : vector<8x1xi1> to vector<8x1xi1>
    %31 = vector.broadcast %30 : vector<8x1xi1> to vector<8x24xi1>
    %32 = vector.shape_cast %29 : vector<1x24xf32> to vector<1x24xf32>
    %33 = vector.broadcast %32 : vector<1x24xf32> to vector<8x24xf32>
    %34 = arith.select %31, %26, %33 : vector<8x24xi1>, vector<8x24xf32>
    %c15_i32 = arith.constant 15 : i32
    %35 = vector.broadcast %c15_i32 : i32 to vector<8x1xi32>
    %36 = arith.cmpi slt, %11, %35 : vector<8x1xi32>
    %cst_12 = arith.constant 0.000000e+00 : f32
    %37 = vector.shape_cast %36 : vector<8x1xi1> to vector<8x1xi1>
    %38 = vector.broadcast %37 : vector<8x1xi1> to vector<8x24xi1>
    %39 = vector.broadcast %cst_12 : f32 to vector<8x24xf32>
    %40 = arith.select %38, %6, %39 : vector<8x24xi1>, vector<8x24xf32>
    %41 = arith.subf %40, %34 : vector<8x24xf32>
    %42 = arith.addf %25, %41 : vector<8x24xf32>
    %c0_13 = arith.constant 0 : index
    %c0_14 = arith.constant 0 : index
    %c0_15 = arith.constant 0 : index
    %43 = vector.load %arg3[%c0_13, %c0_14, %c0_15] : memref<1x8x24xf32, #tpu.memory_space<vmem>>, vector<1x8x24xf32>
    %44 = vector.shape_cast %43 : vector<1x8x24xf32> to vector<8x24xf32>
    %45 = vector.shape_cast %42 : vector<8x24xf32> to vector<1x8x24xf32>
    tpu.vector_store %arg3[%c0_13, %c0_14, %c0_15], %45 {strides = array<i32>} : memref<1x8x24xf32, #tpu.memory_space<vmem>>, vector<1x8x24xf32>,
    %46 = vector.extract_strided_slice %6 {offsets = [7, 0], sizes = [1, 24], strides = [1, 1]} : vector<8x24xf32> to vector<1x24xf32>
    %c0_16 = arith.constant 0 : index
    %c0_17 = arith.constant 0 : index
    %47 = vector.load %arg4[%c0_16, %c0_17] : memref<1x24xf32, #tpu.memory_space<vmem>>, vector<1x24xf32>
    tpu.vector_store %arg4[%c0_16, %c0_17], %46 {strides = array<i32>} : memref<1x24xf32, #tpu.memory_space<vmem>>, vector<1x24xf32>,
    return
  }
  func.func @transform_0(%arg0: i32) -> (i32, i32, i32) {
    %c0_i32 = arith.constant 0 : i32
    %c0_i32_0 = arith.constant 0 : i32
    %c0_i32_1 = arith.constant 0 : i32
    return %c0_i32, %arg0, %c0_i32_0 : i32, i32, i32
  }
  func.func @transform_1(%arg0: i32) -> (i32, i32, i32) {
    %c1_i32 = arith.constant 1 : i32
    %c0_i32 = arith.constant 0 : i32
    %c0_i32_0 = arith.constant 0 : i32
    return %c1_i32, %arg0, %c0_i32 : i32, i32, i32
  }
  func.func @transform_2(%arg0: i32) -> (i32, i32, i32) {
    %c0_i32 = arith.constant 0 : i32
    %c0_i32_0 = arith.constant 0 : i32
    %c0_i32_1 = arith.constant 0 : i32
    return %c0_i32, %arg0, %c0_i32_0 : i32, i32, i32
  }
}

</mosaic_0001>

<bundles_post_ra>
// kernel: tpu_custom_call.1
= control target key start
LH: loop header
LB: loop body
LE: loop exit
PB: predicated region body
PF: predicated region fallthrough
CT: control target
= control target key end

     0   :  { %7 = vsyncpa [#allocation4], 0  ;;  %s807_s0 = inlined_call_operand.hbm [shape: f32[2,16,24], index: 0, kind: input, shape index: {}]   ;;  %s808_s1 = inlined_call_operand.hbm [shape: f32[2,16,24], index: 1, kind: input, shape index: {}]   ;;  %s809_s2 = inlined_call_operand.hbm [shape: f32[1,16,24], index: 2, kind: output, shape index: {}]  }
   0x1   :  { %9 = vsyncpa [#allocation4 + $0x1], 0 }
   0x2   :  { %10 = vsyncpa [#allocation7], 0 }
   0x3   :  { %12 = vsyncpa [#allocation7 + $0x1], 0 }
   0x4   :  { %13 = vsyncpa [#allocation5], 0 }
   0x5   :  { %15 = vsyncpa [#allocation5 + $0x1], 0  ;;  %s588_s9 = smov 0   ;;  %s590_s10 = smov 0  }
   0x6   :  { %s592_s11 = smov 0   ;;  %s594_s12 = smov 0  }
   0x7 LB: > { %s609_s13 = sadd.s32 4294967295, %s565_s12   ;;  %s362_s14 = sadd.s32 4294967294, %s565_s12   ;;  %s565_s12 = sphi %s594_s12, %s828_s12   ;;  %s561_s11 = sphi %s592_s11, %s827_s11   ;;  %s557_s10 = sphi %s590_s10, %s826_s10   ;;  %s553_s9 = sphi %s588_s9, %s825_s9  }
   0x8   : > { %s613_s15 = sadd.s32 1, %s565_s12   ;;  %s28_s16 = sadd.s32 1, %s561_s11 }
   0x9   : > { %s25_s17 = ssub.s32 %s565_s12, %s613_s15  ;;  %p35_p0 = scmp.ne.s32.totalorder %s561_s11, %s557_s10 }
   0xa   : > { %p26_p1 = scmp.eq.s32.totalorder %s25_s17, 0  ;;  %p36_p2 = scmp.eq.s32.totalorder %s565_s12, 0 }
   0xb   : > { %p41_p3 = scmp.ne.s32.totalorder %s557_s10, %s553_s9  ;;  %p42_p4 = scmp.eq.s32.totalorder %s609_s13, 0 }
   0xc   : > { %s625_s18 = scalar_select %p26_p1, %s561_s11, %s28_s16  }
   0xd   : > { %p627_p5 = por %p36_p2, %p35_p0  ;;  %p631_p6 = por %p42_p4, %p41_p3 }
   0xe   : > { %p91_p7 = scmp.eq.s32.totalorder %s609_s13, 1  ;;  %p97_p8 = scmp.eq.s32.totalorder %s362_s14, 1 }
   0xf   : > { %s813_s20 = scalar_select %p631_p6, 1, 0 }
  0x10   : > { %p397_p10 = scmp.lt.s32.totalorder %s565_s12, 2  ;;  %p638_p11 = por %p91_p7, %p35_p0 }
  0x11   : > { %p642_p12 = por %p97_p8, %p41_p3  ;;  %s647_s23 = sand.u32 1, %s561_s11  }
  0x12   : > { %s814_s21 = scalar_select %p638_p11, 1, 0 }
  0x13   : > { %s815_s22 = scalar_select %p642_p12, 1, 0 }
  0x14   : > { %s366_s24 = sshll.u32 %s565_s12, 7  ;;  %s365_s25 = sshll.u32 %s647_s23, 3 }
  0x15   : > { %s656_s28 = scalar_lea.hbm %s807_s0, %s366_s24  ;;  %s121_s29 = scalar_lea.vmem [#allocation3], %s365_s25 }
  0x16   : > { %s128_s30 = sshll.u32 %s121_s29, 4  ;;  %p662_p13 = pnand %p397_p10, %p627_p5  ;;  %s666_s30 = int_to_ptr.vmem [resolvable:$true] %s128_s30 }
  0x17   : > { %s118_s4 = scalar_lea.sflag [#allocation4], %s647_s23  ;;  %s434_s5 = scalar_lea.hbm %s656_s28, 128 }
  0x18   : > { %p435_p2 = scmp.ne.s32.totalorder %s656_s28, %s434_s5  ;;  %p436_p3 = pneg %p662_p13 }
  0x19   : > { %s439_s8 = scalar_lea.hbm %s807_s0, 512  ;;  %p440_p5 = scmp.lt.u32.totalorder %s656_s28, %s807_s0 }
  0x1a   : > { %p437_p4 = pnand %p436_p3, %p435_p2  ;;  %p441_p8 = scmp.lt.u32.totalorder %s439_s8, %s434_s5 }
  0x1b   : > { %p443_p9 = scmp.lt.u32.totalorder %s434_s5, %s656_s28 }
  0x1c   : > { %p438_p7 = pneg %p437_p4  ;;  %p442_p10 = por %p441_p8, %p440_p5 }
  0x1e   : > { %p444_p0 = por %p443_p9, %p442_p10 }
  0x20   : > { %p445_p1 = pnand %p444_p0, %p438_p7 }
  0x22   : > { %448 = shalt.err (!%p445_p1)
}
  0x23   : > { %s449_s17 = scalar_lea.vmem %s666_s30, 128  ;;  %s567_s19 = smov [#allocation3]  }
  0x24   : > { %p450_p2 = scmp.ne.s32.totalorder %s666_s30, %s449_s17  ;;  %s454_s26 = sshll.u32 %s567_s19, 4  ;;  %s455_s26 = int_to_ptr.vmem [resolvable:$false] %s454_s26 }
  0x25   : > { %s456_s27 = scalar_lea.vmem %s455_s26, 256  ;;  %p457_p11 = scmp.lt.s32.totalorder %s666_s30, %s455_s26 }
  0x26   : > { %p452_p4 = pnand %p450_p2, %p436_p3  ;;  %p458_p5 = scmp.lt.s32.totalorder %s456_s27, %s449_s17 }
  0x28   : > { %p453_p12 = pneg %p452_p4  ;;  %p459_p8 = por %p458_p5, %p457_p11 }
  0x2a   : > { %p460_p9 = pnand %p459_p8, %p453_p12 }
  0x2c   : > { %463 = shalt.err (!%p460_p9)
}
  0x2d   : > { %389 = dma.hbm_to_vmem [thread:$0]  (!%p662_p13), %s656_s28, 128, %s666_s30, %s118_s4  }
  0x2e   : > { %p817_p0 = scmp.lt.s32.totalorder %s565_s12, 3  ;;  %p818_p1 = scmp.ge.s32.totalorder %s565_s12, 1 }
  0x2f   : > { %s304_s7 = scalar_lea.hbm %s808_s1, %s366_s24  ;;  %s139_s14 = scalar_lea.vmem [#allocation6], %s365_s25 }
  0x30   : > { %p700_p7 = pnand %p818_p1, %p817_p0  ;;  %s709_s8 = scalar_lea.hbm %s304_s7, 256 }
  0x31   : > { %s147_s16 = sshll.u32 %s139_s14, 4  ;;  %s136_s28 = scalar_lea.sflag [#allocation7], %s647_s23  ;;  %s148_s16 = int_to_ptr.vmem [resolvable:$true] %s147_s16 }
  0x32   : > { %s819_s29 = scalar_select %p700_p7, 1, 0 }
  0x33   : > { %s494_s30 = scalar_lea.hbm %s304_s7, 384  ;;  %s469_s24 = scalar_lea.hbm %s808_s1, 512 }
  0x34   : > { %p465_p11 = scmp.ne.s32.totalorder %s709_s8, %s494_s30  ;;  %p470_p2 = scmp.lt.u32.totalorder %s709_s8, %s808_s1 }
  0x35   : > { %p471_p4 = scmp.lt.u32.totalorder %s469_s24, %s494_s30  ;;  %p473_p8 = scmp.lt.u32.totalorder %s494_s30, %s709_s8 }
  0x36   : > { %p467_p12 = pnand %p465_p11, %p436_p3 }
  0x37   : > { %p472_p5 = por %p471_p4, %p470_p2 }
  0x38   : > { %p468_p10 = pneg %p467_p12 }
  0x39   : > { %p474_p9 = por %p473_p8, %p472_p5 }
  0x3b   : > { %p475_p0 = pnand %p474_p9, %p468_p10 }
  0x3d   : > { %478 = shalt.err (!%p475_p0)
}
  0x3e   : > { %s479_s23 = scalar_lea.vmem %s148_s16, 128  ;;  %s568_s25 = smov [#allocation6]  }
  0x3f   : > { %p480_p1 = scmp.ne.s32.totalorder %s148_s16, %s479_s23  ;;  %s484_s27 = sshll.u32 %s568_s25, 4  ;;  %s485_s27 = int_to_ptr.vmem [resolvable:$false] %s484_s27 }
  0x40   : > { %s486_s5 = scalar_lea.vmem %s485_s27, 256  ;;  %p487_p6 = scmp.lt.s32.totalorder %s148_s16, %s485_s27 }
  0x41   : > { %p482_p11 = pnand %p480_p1, %p436_p3  ;;  %p488_p7 = scmp.lt.s32.totalorder %s486_s5, %s479_s23 }
  0x43   : > { %p483_p12 = pneg %p482_p11  ;;  %p489_p2 = por %p488_p7, %p487_p6 }
  0x45   : > { %p490_p4 = pnand %p489_p2, %p483_p12 }
  0x47   : > { %493 = shalt.err (!%p490_p4)
}
  0x48   : > { %392 = dma.hbm_to_vmem [thread:$0]  (!%p662_p13), %s709_s8, 128, %s148_s16, %s136_s28  }
  0x49   : > { %p820_p10 = scmp.ne.s32.totalorder %s819_s29, 0 }
  0x4a   : > { %s735_s6 = sand.u32 (!%p820_p10), 1, %s557_s10   ;;  %p821_p6 = scmp.ne.s32.totalorder (!%p820_p10), %s813_s20, 0 }
  0x4b   : > { %156 = sbr.rel (%p820_p10) target bundleno = 461 (0x1cd), region = 28  ;;  %s738_s7 = sshll.u32 (!%p820_p10), %s735_s6, 3 }
  0x4c   : > { %s159_s14 = scalar_lea.sflag (!%p820_p10), [#allocation4], %s735_s6  ;;  %s162_s30 = scalar_lea.vmem (!%p820_p10), [#allocation3], %s738_s7 }
  0x52   : > { %540 = dma.done.wait (%p821_p6), %s159_s14, 128  }
  0x53   : > { %542 = vsyncadd (%p821_p6), %s159_s14, 4294967168  ;;  %s168_s3 = scalar_lea.sflag [#allocation7], %s735_s6  ;;  %s171_s29 = scalar_lea.vmem [#allocation6], %s738_s7 }
  0x54   : > { %544 = dma.done.wait (%p821_p6), %s168_s3, 128  }
  0x55   : > { %546 = vsyncadd (%p821_p6), %s168_s3, 4294967168  ;;  %s196_s8 = scalar_lea.vmem [#allocation8], %s738_s7  ;;  %p373_p13 = scmp.ne.s32.totalorder %s609_s13, 0 }
  0x56   : > { %vm201_vm0 = vcmask (!%p373_p13), 188416   ;;  %v569_v0 = vmov (!%p373_p13), 0.0  }
  0x57   : > { %200 = sbr.rel (%p373_p13) target bundleno = 94 (0x5e), region = 40  ;;  %202 = vst.msk [vmem:[#allocation2] sm:$0x1] (!%p373_p13), %vm201_vm0, %v569_v0 }
  0x5e PF: > { %v203_v1 = vld [vmem:[%s162_s30] sm:$0xff]  ;;  %s570_s16 = smov 24   ;;  %v204_v2 = vld [vmem:[%s171_s29] sm:$0xff]  ;;  %v205_v3 = vlaneseq  ;;  %s374_s28 = sshll.u32 %s609_s13, 3  ;;  %vm252_vm1 = vcmask 195591   ;;  %vm212_vm4 = vcmask 1047744  }
  0x5f   : > { %213 = vrot.lane.b32.xlu0 %v203_v1, %s570_s16  ;;  %v375_v4 = vld [vmem:[#allocation2] ss:$0 sm:$0xff]  ;;  %v210_v5 = vstv %s374_s28  ;;  %v232_v6 = vrot.slane %v204_v2, 7  ;;  %s571_s20 = smov 105   ;;  %s377_s4 = sshll.u32 %s609_s13, 7  ;;  %vm250_vm7 = vcmask 195584  }
  0x60   : > { %253 = vst.msk [vmem:[#allocation2 - $0x7] sm:$0x80] %vm252_vm1, %v204_v2  ;;  %v208_v7 = vshrl.u32 %v205_v3, 7  ;;  %v206_v16 = vand.u32 127, %v205_v3  ;;  %s268_s17 = sshll.u32 %s196_s8, 4  ;;  %s761_s26 = scalar_lea.hbm %s809_s2, %s377_s4  ;;  %s763_s17 = int_to_ptr.vmem [resolvable:$true] %s268_s17 }
  0x61   : > { %s255_s23 = scalar_lea.sflag [#allocation5], %s735_s6  ;;  %s495_s25 = scalar_lea.vmem %s763_s17, 128 }
  0x62   : > { %v211_v8 = vadd.s32 %v210_v5, %v208_v7  ;;  %vm233_vm2 = vcmp.gt.s32.totalorder %v208_v7, 0  ;;  %vm219_vm5 = vcmp.lt.s32.totalorder %v206_v16, 23  ;;  %vm223_vm6 = vcmp.gt.s32.totalorder %v206_v16, 0  ;;  %p496_p3 = scmp.ne.s32.totalorder %s763_s17, %s495_s25  ;;  %p822_p7 = scmp.ne.s32.totalorder %s814_s21, 0 }
  0x63   : > { %v243_v9 = vsel %vm233_vm2, %v232_v6, %v375_v4  ;;  %v222_v17 = vsel %vm219_vm5, %v203_v1, 0.0  ;;  %s572_s13 = smov [#allocation8]  }
  0x64   : > { %vm244_vm3 = vcmp.lt.s32.totalorder %v211_v8, 15  ;;  %p497_p5 = pnand %p496_p3, %p822_p7  ;;  %s499_s27 = sshll.u32 %s572_s13, 4  ;;  %s500_s27 = int_to_ptr.vmem [resolvable:$false] %s499_s27 }
  0x65   : > { %v247_v10 = vsel %vm244_vm3, %v204_v2, 0.0  ;;  %s501_s5 = scalar_lea.vmem %s500_s27, 256  ;;  %p502_p9 = scmp.lt.s32.totalorder %s763_s17, %s500_s27 }
  0x66   : > { %v248_v11 = vsub.f32 %v247_v10, %v243_v9  ;;  %p498_p8 = pneg %p497_p5  ;;  %p503_p0 = scmp.lt.s32.totalorder %s501_s5, %s495_s25 }
  0x68   : > { %p504_p1 = por %p503_p0, %p502_p9 }
  0x6a   : > { %p505_p11 = pnand %p504_p1, %p498_p8 }
  0xd1   : > { %v214_v12 = vpop.permute.xlu0 %213 }
  0xd2   : > { %v215_v13 = vsel %vm212_vm4, %v214_v12, %v203_v1 }
  0xd3   : > { %216 = vrot.lane.b32.xlu0 %v215_v13, %s570_s16 }
 0x145   : > { %v217_v14 = vpop.permute.xlu0 %216 }
 0x146   : > { %v218_v15 = vsel %vm212_vm4, %v217_v14, %v203_v1 }
 0x147   : > { %227 = vrot.lane.b32.xlu1 %v218_v15, %s571_s20 }
 0x1b9   : > { %v228_v18 = vpop.permute.xlu1 %227 }
 0x1ba   : > { %v230_v19 = vsel %vm223_vm6, %v228_v18, 0.0 }
 0x1bb   : > { %v231_v20 = vsub.f32 %v222_v17, %v230_v19 }
 0x1bd   : > { %v249_v21 = vadd.f32 %v248_v11, %v231_v20 }
 0x1bf   : > { %251 = vst.msk [vmem:[%s196_s8] sm:$0xff] %vm250_vm7, %v249_v21 }
 0x1c0   : > { %508 = shalt.err (!%p505_p11)
}
 0x1c1   : > { %s509_s6 = scalar_lea.hbm %s761_s26, 128  ;;  %s513_s30 = scalar_lea.hbm %s809_s2, 256 }
 0x1c2   : > { %p510_p12 = scmp.ne.s32.totalorder %s761_s26, %s509_s6  ;;  %p514_p10 = scmp.lt.u32.totalorder %s761_s26, %s809_s2 }
 0x1c3   : > { %p515_p6 = scmp.lt.u32.totalorder %s513_s30, %s509_s6  ;;  %p517_p3 = scmp.lt.u32.totalorder %s509_s6, %s761_s26 }
 0x1c4   : > { %p511_p2 = pnand %p510_p12, %p822_p7 }
 0x1c5   : > { %p516_p13 = por %p515_p6, %p514_p10 }
 0x1c6   : > { %p512_p4 = pneg %p511_p2 }
 0x1c7   : > { %p518_p5 = por %p517_p3, %p516_p13 }
 0x1c9   : > { %p519_p8 = pnand %p518_p5, %p512_p4 }
 0x1cb   : > { %522 = shalt.err (!%p519_p8)
}
 0x1cc   : > { %384 = dma.vmem_to_hbm [thread:$0]  (%p822_p7), %s763_s17, 128, %s761_s26, %s255_s23  }
 0x1cd PF: > { %s280_s8 = sand.u32 1, %s553_s9   ;;  %p823_p9 = scmp.ne.s32.totalorder %s815_s22, 0 }
 0x1ce   : > { %p824_p0 = scmp.ge.s32.totalorder %s565_s12, 2  ;;  %s281_s16 = scalar_lea.sflag [#allocation5], %s280_s8 }
 0x1d0   : > { %p394_p1 = pnand %p824_p0, %p823_p9 }
 0x1d2   : > { %548 = dma.done.wait (!%p394_p1), %s281_s16, 128  }
 0x1d3   : > { %550 = vsyncadd (!%p394_p1), %s281_s16, 4294967168  ;;  %p18_p11 = scmp.ge.s32.totalorder %s613_s15, 4   ;;  %s825_s9 = smov %s557_s10 }
 0x1d4   : > { %s826_s10 = smov %s561_s11  ;;  %s827_s11 = smov %s625_s18 }
 0x1d5   : > { %s828_s12 = smov %s613_s15  ;;  %20 = sbr.rel (!%p18_p11) target bundleno = 7 (0x7), region = 90 }
 0x1dc   :  { %286 = vsyncpa [#allocation4], 1 }
 0x1dd   :  { %288 = vsyncpa [#allocation4 + $0x1], 1 }
 0x1de   :  { %289 = vsyncpa [#allocation7], 1 }
 0x1df   :  { %291 = vsyncpa [#allocation7 + $0x1], 1 }
 0x1e0   :  { %292 = vsyncpa [#allocation5], 1 }
 0x1e1   :  { %294 = vsyncpa [#allocation5 + $0x1], 1 }

</bundles_post_ra>
